<compile_context>
chip_gen: v7x
topology: tpu7x:2x2x1
jax: 0.10.0
libtpu: 0.0.40
codegen_flags: <defaults>
</compile_context>

<pallas_src>
import functools

import jax
import jax.numpy as jnp
from jax.experimental import pallas as pl
from jax.experimental.pallas import tpu as pltpu

LOG_SIG_MAX = 2.0
LOG_SIG_MIN = -20.0


def _policy_kernel(x_ref, w1_ref, b1_ref, w2_ref, b2_ref, w3_ref, b3_ref,
                   mean_ref):
    # hidden layer 1: Linear + ReLU   (MXU matmul, f32 accumulation)
    h1 = jnp.dot(x_ref[...], w1_ref[...], preferred_element_type=jnp.float32)
    h1 = jnp.maximum(h1 + b1_ref[...].astype(jnp.float32), 0.0)
    # hidden layer 2: Linear + ReLU
    h2 = jnp.dot(h1.astype(w2_ref.dtype), w2_ref[...],
                 preferred_element_type=jnp.float32)
    h2 = jnp.maximum(h2 + b2_ref[...].astype(jnp.float32), 0.0)
    # mean head
    mean = jnp.dot(h2.astype(w3_ref.dtype), w3_ref[...],
                   preferred_element_type=jnp.float32)
    mean_ref[...] = (mean + b3_ref[...].astype(jnp.float32)).astype(mean_ref.dtype)


def _round_up(x, m):
    return ((x + m - 1) // m) * m


@functools.partial(jax.jit, static_argnames=("compute_dtype",))
def symbolic_gaussian_policy_forward(state, params, *, compute_dtype=jnp.float32):
    """Returns (mean, log_std) matching the PyTorch forward pass.

    state:   (B, num_inputs) float32
    mean:    (B, num_actions) float32
    log_std: (num_actions,) float32

    compute_dtype: jnp.float32 (default) or jnp.bfloat16 for bandwidth-bound
    large-batch inference on v6e/v7x (MXU still accumulates in f32).
    """
    w1, b1, w2, b2, w3, b3, log_stdev = (
        params["w1"], params["b1"], params["w2"], params["b2"],
        params["w3"], params["b3"], params["log_stdev"],
    )
    B, num_inputs = state.shape
    H = w1.shape[1]
    A = w3.shape[1]

    # Batch tile: multiple of 8 (sublane), capped at 512 (perf-swept sweet
    # spot); pad the batch so the grid divides evenly.
    TILE_B = min(512, _round_up(B, 8))
    B_pad = _round_up(B, TILE_B)
    if B_pad != B:
        state = jnp.pad(state, ((0, B_pad - B), (0, 0)))
    num_tiles = B_pad // TILE_B

    # Optional bf16 cast at the call boundary (halves HBM bytes on the
    # mem-bound path); accumulation inside the kernel stays f32.
    cd = compute_dtype
    state_c = state.astype(cd)
    w1c, w2c, w3c = w1.astype(cd), w2.astype(cd), w3.astype(cd)
    b1c, b2c, b3c = b1.astype(cd), b2.astype(cd), b3.astype(cd)

    flops = 2 * B_pad * (num_inputs * H + H * H + H * A)
    bytes_accessed = (
        state_c.size * state_c.dtype.itemsize
        + sum(a.size * a.dtype.itemsize for a in (w1c, b1c, w2c, b2c, w3c, b3c))
        + B_pad * A * jnp.dtype(jnp.float32).itemsize
    )

    mean_padded = pl.pallas_call(
        _policy_kernel,
        out_shape=jax.ShapeDtypeStruct((B_pad, A), jnp.float32),
        grid=(num_tiles,),
        in_specs=[
            # state: tiled along batch; features (last dim) kept whole.
            pl.BlockSpec((TILE_B, num_inputs), lambda i: (i, 0)),
            # weights / biases: full blocks, constant index_map -> stay
            # resident in VMEM, no re-DMA per grid step.
            pl.BlockSpec((num_inputs, H), lambda i: (0, 0)),
            pl.BlockSpec((1, H), lambda i: (0, 0)),
            pl.BlockSpec((H, H), lambda i: (0, 0)),
            pl.BlockSpec((1, H), lambda i: (0, 0)),
            pl.BlockSpec((H, A), lambda i: (0, 0)),
            pl.BlockSpec((1, A), lambda i: (0, 0)),
        ],
        out_specs=pl.BlockSpec((TILE_B, A), lambda i: (i, 0)),
        compiler_params=pltpu.CompilerParams(
            dimension_semantics=("parallel",),   # shards grid across TCs on v7x
        ),
        cost_estimate=pl.CostEstimate(
            flops=flops, transcendentals=0, bytes_accessed=bytes_accessed),
    )(state_c, w1c, b1c, w2c, b2c, w3c, b3c)

    mean = mean_padded[:B]

    # log_std depends only on a parameter -> compute once in XLA, not per tile.
    log_std = jnp.clip(log_stdev, LOG_SIG_MIN, LOG_SIG_MAX)
    return mean, log_std


def init_params(key, num_inputs, num_actions, hidden_dim):
    """Deterministic init mirroring weights_init_: xavier_uniform weights,
    zero biases, zero log_stdev.  Biases are stored (1, H) once so the
    pallas_call signature is stable and no per-call reshape is needed."""
    def xavier_uniform(k, fan_in, fan_out):
        bound = jnp.sqrt(6.0 / (fan_in + fan_out))
        # stored as (in, out) so the kernel does x @ W (== PyTorch x @ W.T)
        return jax.random.uniform(k, (fan_in, fan_out), jnp.float32,
                                  minval=-bound, maxval=bound)

    k1, k2, k3 = jax.random.split(key, 3)
    return {
        "w1": xavier_uniform(k1, num_inputs, hidden_dim),
        "b1": jnp.zeros((1, hidden_dim), jnp.float32),
        "w2": xavier_uniform(k2, hidden_dim, hidden_dim),
        "b2": jnp.zeros((1, hidden_dim), jnp.float32),
        "w3": xavier_uniform(k3, hidden_dim, num_actions),
        "b3": jnp.zeros((1, num_actions), jnp.float32),
        "log_stdev": jnp.zeros((num_actions,), jnp.float32),
    }


def _reference_forward(state, params):
    h1 = jnp.maximum(state @ params["w1"] + params["b1"], 0.0)
    h2 = jnp.maximum(h1 @ params["w2"] + params["b2"], 0.0)
    mean = h2 @ params["w3"] + params["b3"]
    log_std = jnp.clip(params["log_stdev"], LOG_SIG_MIN, LOG_SIG_MAX)
    return mean, log_std


if __name__ == "__main__":
    num_inputs, num_actions, hidden_dim = 16, 8, 32

    key = jax.random.PRNGKey(0)
    k_params, k_small, k_big = jax.random.split(key, 3)
    params = init_params(k_params, num_inputs, num_actions, hidden_dim)

    # Small batch (B=4): single padded tile path.
    state_small = jax.random.normal(k_small, (4, num_inputs), jnp.float32)
    mean_s, log_std_s = symbolic_gaussian_policy_forward(state_small, params)
    jax.block_until_ready((mean_s, log_std_s))
    ref_mean_s, ref_log_std_s = _reference_forward(state_small, params)
    assert mean_s.shape == (4, num_actions)
    assert log_std_s.shape == (num_actions,)
    assert jnp.allclose(mean_s, ref_mean_s, atol=1e-5, rtol=1e-5)
    assert jnp.allclose(log_std_s, ref_log_std_s)

    # Larger batch (B=1000): multi-tile grid path with batch padding.
    state_big = jax.random.normal(k_big, (1000, num_inputs), jnp.float32)
    mean_b, log_std_b = symbolic_gaussian_policy_forward(state_big, params)
    jax.block_until_ready((mean_b, log_std_b))
    ref_mean_b, _ = _reference_forward(state_big, params)
    assert mean_b.shape == (1000, num_actions)
    assert jnp.allclose(mean_b, ref_mean_b, atol=1e-5, rtol=1e-5)

    print("KERNEL_OK")
</pallas_src>

<mosaic_0001>
module attributes {stable_mosaic.version = 11 : i64} {
  func.func @_policy_kernel(%arg0: i32, %arg1: memref<8x16xf32, #tpu.memory_space<vmem>>, %arg2: memref<16x32xf32, #tpu.memory_space<vmem>>, %arg3: memref<1x32xf32, #tpu.memory_space<vmem>>, %arg4: memref<32x32xf32, #tpu.memory_space<vmem>>, %arg5: memref<1x32xf32, #tpu.memory_space<vmem>>, %arg6: memref<32x8xf32, #tpu.memory_space<vmem>>, %arg7: memref<1x8xf32, #tpu.memory_space<vmem>>, %arg8: memref<8x8xf32, #tpu.memory_space<vmem>>) attributes {dimension_semantics = [#tpu.dimension_semantics<parallel>], iteration_bounds = array<i64: 1>, scalar_prefetch = 0 : i64, scratch_operands = 0 : i64, tpu.core_type = #tpu.core_type<tc>, window_params = [{transform_indices = @transform_0, window_bounds = array<i64: 8, 16>}, {pipeline_mode = #tpu.pipeline_mode<synchronous>, transform_indices = @transform_1, window_bounds = array<i64: 16, 32>}, {pipeline_mode = #tpu.pipeline_mode<synchronous>, transform_indices = @transform_2, window_bounds = array<i64: 1, 32>}, {pipeline_mode = #tpu.pipeline_mode<synchronous>, transform_indices = @transform_3, window_bounds = array<i64: 32, 32>}, {pipeline_mode = #tpu.pipeline_mode<synchronous>, transform_indices = @transform_4, window_bounds = array<i64: 1, 32>}, {pipeline_mode = #tpu.pipeline_mode<synchronous>, transform_indices = @transform_5, window_bounds = array<i64: 32, 8>}, {pipeline_mode = #tpu.pipeline_mode<synchronous>, transform_indices = @transform_6, window_bounds = array<i64: 1, 8>}, {transform_indices = @transform_7, window_bounds = array<i64: 8, 8>}]} {
    %c0 = arith.constant 0 : index
    %c0_0 = arith.constant 0 : index
    %0 = vector.load %arg1[%c0, %c0_0] : memref<8x16xf32, #tpu.memory_space<vmem>>, vector<8x16xf32>
    %c0_1 = arith.constant 0 : index
    %c0_2 = arith.constant 0 : index
    %1 = vector.load %arg2[%c0_1, %c0_2] : memref<16x32xf32, #tpu.memory_space<vmem>>, vector<16x32xf32>
    %cst = arith.constant dense<0.000000e+00> : vector<8x32xf32>
    %2 = tpu.matmul %0, %1, %cst {dimension_numbers = #tpu.dot_dimension_numbers<[1], [0], [0], [1], [0, 0, 1, 1], [], []>} : vector<8x16xf32>, vector<16x32xf32>, vector<8x32xf32> -> vector<8x32xf32>
    %c0_3 = arith.constant 0 : index
    %c0_4 = arith.constant 0 : index
    %3 = vector.load %arg3[%c0_3, %c0_4] : memref<1x32xf32, #tpu.memory_space<vmem>>, vector<1x32xf32>
    %4 = vector.broadcast %3 : vector<1x32xf32> to vector<8x32xf32>
    %5 = arith.addf %2, %4 : vector<8x32xf32>
    %cst_5 = arith.constant 0.000000e+00 : f32
    %6 = vector.broadcast %cst_5 : f32 to vector<8x32xf32>
    %7 = arith.maximumf %5, %6 : vector<8x32xf32>
    %c0_6 = arith.constant 0 : index
    %c0_7 = arith.constant 0 : index
    %8 = vector.load %arg4[%c0_6, %c0_7] : memref<32x32xf32, #tpu.memory_space<vmem>>, vector<32x32xf32>
    %cst_8 = arith.constant dense<0.000000e+00> : vector<8x32xf32>
    %9 = tpu.matmul %7, %8, %cst_8 {dimension_numbers = #tpu.dot_dimension_numbers<[1], [0], [0], [1], [0, 0, 1, 1], [], []>} : vector<8x32xf32>, vector<32x32xf32>, vector<8x32xf32> -> vector<8x32xf32>
    %c0_9 = arith.constant 0 : index
    %c0_10 = arith.constant 0 : index
    %10 = vector.load %arg5[%c0_9, %c0_10] : memref<1x32xf32, #tpu.memory_space<vmem>>, vector<1x32xf32>
    %11 = vector.broadcast %10 : vector<1x32xf32> to vector<8x32xf32>
    %12 = arith.addf %9, %11 : vector<8x32xf32>
    %cst_11 = arith.constant 0.000000e+00 : f32
    %13 = vector.broadcast %cst_11 : f32 to vector<8x32xf32>
    %14 = arith.maximumf %12, %13 : vector<8x32xf32>
    %c0_12 = arith.constant 0 : index
    %c0_13 = arith.constant 0 : index
    %15 = vector.load %arg6[%c0_12, %c0_13] : memref<32x8xf32, #tpu.memory_space<vmem>>, vector<32x8xf32>
    %cst_14 = arith.constant dense<0.000000e+00> : vector<8x8xf32>
    %16 = tpu.matmul %14, %15, %cst_14 {dimension_numbers = #tpu.dot_dimension_numbers<[1], [0], [0], [1], [0, 0, 1, 1], [], []>} : vector<8x32xf32>, vector<32x8xf32>, vector<8x8xf32> -> vector<8x8xf32>
    %c0_15 = arith.constant 0 : index
    %c0_16 = arith.constant 0 : index
    %17 = vector.load %arg7[%c0_15, %c0_16] : memref<1x8xf32, #tpu.memory_space<vmem>>, vector<1x8xf32>
    %18 = vector.broadcast %17 : vector<1x8xf32> to vector<8x8xf32>
    %19 = arith.addf %16, %18 : vector<8x8xf32>
    %c0_17 = arith.constant 0 : index
    %c0_18 = arith.constant 0 : index
    %20 = vector.load %arg8[%c0_17, %c0_18] : memref<8x8xf32, #tpu.memory_space<vmem>>, vector<8x8xf32>
    tpu.vector_store %arg8[%c0_17, %c0_18], %19 {strides = array<i32>} : memref<8x8xf32, #tpu.memory_space<vmem>>, vector<8x8xf32>,
    return
  }
  func.func @transform_0(%arg0: i32) -> (i32, i32) {
    %c0_i32 = arith.constant 0 : i32
    %c0_i32_0 = arith.constant 0 : i32
    return %arg0, %c0_i32 : i32, i32
  }
  func.func @transform_1(%arg0: i32) -> (i32, i32) {
    %c0_i32 = arith.constant 0 : i32
    %c0_i32_0 = arith.constant 0 : i32
    %c0_i32_1 = arith.constant 0 : i32
    return %c0_i32, %c0_i32_0 : i32, i32
  }
  func.func @transform_2(%arg0: i32) -> (i32, i32) {
    %c0_i32 = arith.constant 0 : i32
    %c0_i32_0 = arith.constant 0 : i32
    %c0_i32_1 = arith.constant 0 : i32
    return %c0_i32, %c0_i32_0 : i32, i32
  }
  func.func @transform_3(%arg0: i32) -> (i32, i32) {
    %c0_i32 = arith.constant 0 : i32
    %c0_i32_0 = arith.constant 0 : i32
    %c0_i32_1 = arith.constant 0 : i32
    return %c0_i32, %c0_i32_0 : i32, i32
  }
  func.func @transform_4(%arg0: i32) -> (i32, i32) {
    %c0_i32 = arith.constant 0 : i32
    %c0_i32_0 = arith.constant 0 : i32
    %c0_i32_1 = arith.constant 0 : i32
    return %c0_i32, %c0_i32_0 : i32, i32
  }
  func.func @transform_5(%arg0: i32) -> (i32, i32) {
    %c0_i32 = arith.constant 0 : i32
    %c0_i32_0 = arith.constant 0 : i32
    %c0_i32_1 = arith.constant 0 : i32
    return %c0_i32, %c0_i32_0 : i32, i32
  }
  func.func @transform_6(%arg0: i32) -> (i32, i32) {
    %c0_i32 = arith.constant 0 : i32
    %c0_i32_0 = arith.constant 0 : i32
    %c0_i32_1 = arith.constant 0 : i32
    return %c0_i32, %c0_i32_0 : i32, i32
  }
  func.func @transform_7(%arg0: i32) -> (i32, i32) {
    %c0_i32 = arith.constant 0 : i32
    %c0_i32_0 = arith.constant 0 : i32
    return %arg0, %c0_i32 : i32, i32
  }
}

</mosaic_0001>

<bundles_post_ra>
// kernel: symbolic_gaussian_policy_forward.1
= control target key start
LH: loop header
LB: loop body
LE: loop exit
PB: predicated region body
PF: predicated region fallthrough
CT: control target
= control target key end

     0   :  { %v353_v0 = vmov 0.0|0.0   ;;  %vm354_vm0 = vmmov 0   ;;  %v355_v3 = vmov 0.0   ;;  %vm36_vm1 = vcmask 130048   ;;  %s444_s1 = inlined_call_operand.vmem [shape: f32[16,32], index: 1, kind: input, shape index: {}]   ;;  %s445_s3 = inlined_call_operand.vmem [shape: f32[32,32], index: 3, kind: input, shape index: {}]   ;;  %s446_s0 = inlined_call_operand.vmem [shape: f32[8,16], index: 0, kind: input, shape index: {}]   ;;  %s447_s5 = inlined_call_operand.vmem [shape: f32[32,8], index: 5, kind: input, shape index: {}]   ;;  %s448_s2 = inlined_call_operand.vmem [shape: f32[1,32], index: 2, kind: input, shape index: {}]   ;;  %s449_s4 = inlined_call_operand.vmem [shape: f32[1,32], index: 4, kind: input, shape index: {}]   ;;  %s450_s6 = inlined_call_operand.vmem [shape: f32[1,8], index: 6, kind: input, shape index: {}]   ;;  %s451_s7 = inlined_call_operand.vmem [shape: f32[8,8], index: 7, kind: output, shape index: {}]  }
   0x1   :  { %335 = vmatprep.subr.bf16.mxu0 %v353_v0  ;;  %v27_v1 = vld [vmem:[%s444_s1] sm:$0xff]  ;;  %v28_v2 = vld [vmem:[%s444_s1 + $0x8] sm:$0xff]  ;;  %310 = vmatprep.mubr.msk.f32.mxu0 %vm354_vm0, %v355_v3  ;;  %v113_v9 = vld [vmem:[%s445_s3 + $0x10] sm:$0xff]  ;;  %vm122_vm2 = vcmask 261120   ;;  %vm281_vm3 = vcmask 64512  }
   0x2   :  { %v336_v4 = vpack.c.bf16 %v28_v2, %v27_v1  ;;  %338 = vmatprep.subr.bf16.mxu1 %v353_v0  ;;  %v111_v5 = vld [vmem:[%s445_s3] sm:$0xff]  ;;  %v112_v6 = vld [vmem:[%s445_s3 + $0x8] sm:$0xff]  ;;  %321 = vmatprep.mubr.msk.f32.mxu1 %vm354_vm0, %v355_v3  ;;  %v114_v10 = vld [vmem:[%s445_s3 + $0x18] sm:$0xff] }
   0x3   :  { %v339_v7 = vpack.c.bf16 %v112_v6, %v111_v5  ;;  %v26_v8 = vld [vmem:[%s446_s0] sm:$0xff]  ;;  %v342_v11 = vpack.c.bf16 %v114_v10, %v113_v9  ;;  %v198_v13 = vld [vmem:[%s447_s5 + $0x8] sm:$0xff]  ;;  %v199_v20 = vld [vmem:[%s447_s5 + $0x10] sm:$0xff] }
   0x4   :  { %337 = vmatpush3.bf16.msra.mxu0 %v336_v4  ;;  %v197_v12 = vld [vmem:[%s447_s5] sm:$0xff]  ;;  %v200_v21 = vld [vmem:[%s447_s5 + $0x18] sm:$0xff] }
   0x5   :  { %340 = vmatpush3.bf16.msra.mxu1 %v339_v7  ;;  %344 = vmatprep.subr.bf16.mxu0 %v353_v0  ;;  %v345_v14 = vpack.c.bf16 %v198_v13, %v197_v12  ;;  %v287_v15 = vld [vmem:[%s448_s2] ss:$0 sm:$0xff]  ;;  %v348_v22 = vpack.c.bf16 %v200_v21, %v199_v20 }
   0x6   :  { %341 = vmatprep.subr.bf16.mxu1 %v353_v0  ;;  %v289_v23 = vld [vmem:[%s449_s4] ss:$0 sm:$0xff] }
   0x7   :  { %311 = vmatmul.mubr.msk.f32.vlgmr.msra.gmra.mrb[0].mxu0 %vm36_vm1, %v26_v8  ;;  %v291_v28 = vld [vmem:[%s450_s6] ss:$0 sm:$0xff] }
   0x8   :  { %332 = vmatprep.mubr.msk.f32.mxu0 %vm354_vm0, %v355_v3  ;;  %346 = vmatpush3.bf16.msra.mxu0 %v345_v14 }
   0x9   :  { %343 = vmatpush3.bf16.msra.mxu1 %v342_v11  ;;  %347 = vmatprep.subr.bf16.mxu0 %v353_v0 }
   0xc   :  { %349 = vmatpush3.bf16.msra.mxu0 %v348_v22 }
  0xda   :  { %v106_v16 = vpop.f32.mrb[0].mxu0 }
  0xdb   :  { %v107_v17 = vadd.f32 %v287_v15, %v106_v16  ;;  %v312_v18 = vpop.f32.mrb[1].mxu0 }
  0xdd   :  { %v110_v19 = vmax.f32 %v107_v17, 0.0 }
  0xdf   :  { %322 = vmatmul.mubr.msk.f32.vlgmr.msra.gmra.mrb[0].mxu1 %vm122_vm2, %v110_v19 }
 0x1b2   :  { %v192_v24 = vpop.f32.mrb[0].mxu1 }
 0x1b3   :  { %v193_v25 = vadd.f32 %v289_v23, %v192_v24  ;;  %v323_v26 = vpop.f32.mrb[1].mxu1 }
 0x1b5   :  { %v196_v27 = vmax.f32 %v193_v25, 0.0 }
 0x1b7   :  { %333 = vmatmul.mubr.msk.f32.vlgmr.msra.gmra.mrb[2].mxu0 %vm122_vm2, %v196_v27 }
 0x28a   :  { %v277_v29 = vpop.f32.mrb[2].mxu0 }
 0x28b   :  { %v278_v30 = vadd.f32 %v291_v28, %v277_v29  ;;  %v334_v31 = vpop.f32.mrb[3].mxu0 }
 0x28d   :  { %282 = vst.msk [vmem:[%s451_s7] sm:$0xff] %vm281_vm3, %v278_v30 }

</bundles_post_ra>
